<compile_context>
chip_gen: v7x
topology: tpu7x:2x2x1
jax: 0.10.0
libtpu: 0.0.40
codegen_flags: <defaults>
</compile_context>

<pallas_src>
import functools

import jax
import jax.numpy as jnp
from jax.experimental import pallas as pl
from jax.experimental.pallas import tpu as pltpu


def _agb_kernel(e_ref, c_ref, w1_ref, w2_ref, w3_ref,
                b1_ref, b2_ref, b3_ref, o_ref, *, mxu_dtype):
    # e_ref / c_ref / o_ref: (1, C, tile_s) blocks in native NCHW layout
    #   (C -> sublanes, spatial -> lanes).
    # w*_ref: (C, C) folded conv+BN weights in `mxu_dtype`.
    # b*_ref: (C, 1) folded BN biases (f32, added after f32 accumulation).
    #
    # Ragged last spatial tile: all contractions are over C, so spatial columns
    # are independent; garbage in Pallas-padded lanes only affects padded output
    # lanes, which the boundary-masked output writeback discards.
    e = e_ref[0].astype(mxu_dtype)            # (C, tile_s)
    c = c_ref[0].astype(mxu_dtype)            # (C, tile_s)
    w1 = w1_ref[...]
    w2 = w2_ref[...]
    w3 = w3_ref[...]

    c1 = jnp.dot(w2, c, preferred_element_type=jnp.float32) + b2_ref[...]
    e1 = jnp.dot(w1, e, preferred_element_type=jnp.float32) + b1_ref[...]
    r = jnp.maximum(e1 + c1, 0.0)

    psi_lin = jnp.dot(w3, r.astype(mxu_dtype),
                      preferred_element_type=jnp.float32) + b3_ref[...]
    psi = jax.nn.sigmoid(psi_lin)

    o_ref[0] = (psi * c1).astype(o_ref.dtype)


def _fold_conv_bn(w, gamma, beta, mean, var, eps=1e-5):
    """Fold eval-mode BatchNorm2d into a 1x1 conv weight (out_c, in_c)."""
    scale = gamma / jnp.sqrt(var + eps)                 # (out_c,)
    w_folded = w * scale[:, None]                       # (out_c, in_c)
    b_folded = beta - mean * scale                      # (out_c,)
    return w_folded, b_folded


def _vmem_capacity_bytes():
    """Physical VMEM of the current TPU generation (fallback: v7x's 64 MiB)."""
    try:
        return int(pltpu.get_tpu_info().vmem_capacity_bytes)
    except Exception:   # non-TPU backend / older API — be conservative (v7x)
        return 64 * 1024 * 1024


def agb_forward(edge_feat, canny_feat, params, *,
                max_tile_s=8192, mxu_dtype=jnp.bfloat16):
    """edge_feat / canny_feat: (N, C, H, W). Returns (N, C, H, W).

    Activations may be f32 or bf16 in HBM (DMA bytes, the bottleneck, scale
    with that dtype).  MXU operands use `mxu_dtype` (default bf16; pass
    jnp.float32 for bit-tight f32 parity with the PyTorch module); the matmul
    accumulation and bias adds are always f32.
    """
    N, C, H, W = edge_feat.shape
    S = H * W
    act_dtype = edge_feat.dtype
    act_isz = jnp.dtype(act_dtype).itemsize
    mxu_isz = jnp.dtype(mxu_dtype).itemsize

    # Fold BN into the 1x1 convs (parameter glue, done once in plain JAX).
    w1, b1 = _fold_conv_bn(params["w1"], params["g1"], params["be1"],
                           params["m1"], params["v1"])
    w2, b2 = _fold_conv_bn(params["w2"], params["g2"], params["be2"],
                           params["m2"], params["v2"])
    w3, b3 = _fold_conv_bn(params["w3"], params["g3"], params["be3"],
                           params["m3"], params["v3"])

    # MXU operands in mxu_dtype; biases stay f32 (added post-accumulation).
    w1 = jnp.asarray(w1, mxu_dtype)
    w2 = jnp.asarray(w2, mxu_dtype)
    w3 = jnp.asarray(w3, mxu_dtype)
    b1 = jnp.asarray(b1, jnp.float32).reshape(C, 1)
    b2 = jnp.asarray(b2, jnp.float32).reshape(C, 1)
    b3 = jnp.asarray(b3, jnp.float32).reshape(C, 1)

    # Native NCHW viewed as (N, C, H*W): pure reshape, no transpose, no pad.
    # NOTE: for fully dense vregs/DMAs, configure the model with C a multiple
    # of the sublane packing (8 for f32, 16 for bf16); odd C still works.
    e = edge_feat.reshape(N, C, S)
    c = canny_feat.reshape(N, C, S)

    # ---- generation-aware VMEM budget & spatial tile -----------------------
    # 128 MiB (v5e/v6e) -> 96 MiB limit; 64 MiB (v7x) -> 48 MiB limit.
    vmem_limit = min(_vmem_capacity_bytes() * 3 // 4, 112 * 1024 * 1024)

    # Grid-invariant weights/biases: double-buffered by default (tiny for
    # typical C); single-buffer them once they stop being tiny so the headroom
    # goes to the spatial tile instead (matters under v7x's 64 MiB VMEM).
    single_buf_weights = C >= 512
    n_wbuf = 1 if single_buf_weights else 2
    weight_bytes = 3 * n_wbuf * (C * C * mxu_isz + C * 4)

    # Bytes per spatial column of a (C, tile_s) slab:
    #   3 streams (e, c, out) x 2 pipeline buffers in the activation dtype
    #   + ~5 f32 intermediates (e1, c1, r, psi, acc) + 3 mxu-dtype casts.
    per_col = C * (6 * act_isz + 5 * 4 + 3 * mxu_isz)
    budget = max(128 * per_col, vmem_limit * 85 // 100 - weight_bytes)
    cap = budget // per_col
    cap = max(128, min(max_tile_s, (cap // 128) * 128))

    # Lane-dense tile: multiple of 128, or the full spatial extent.
    tile_s = S if S <= cap else cap

    # Megacore (v7x: 2 TCs sharded over "parallel" grid axes): make sure the
    # grid has >= 2 program points.  On 1-TC chips the extra step is ~0.35 us.
    if N * pl.cdiv(S, tile_s) < 2 and S > 128:
        half = pl.cdiv((S + 1) // 2, 128) * 128     # lane-dense ceil(S/2)
        if half < S:
            tile_s = half

    grid = (N, pl.cdiv(S, tile_s))    # ragged last tile -> masked writeback

    act_spec = pl.BlockSpec((1, C, tile_s), lambda n, s: (n, 0, s))
    w_kwargs = dict(pipeline_mode=pl.Buffered(1)) if single_buf_weights else {}
    w_spec = pl.BlockSpec((C, C), lambda n, s: (0, 0), **w_kwargs)
    b_spec = pl.BlockSpec((C, 1), lambda n, s: (0, 0), **w_kwargs)

    out = pl.pallas_call(
        functools.partial(_agb_kernel, mxu_dtype=mxu_dtype),
        out_shape=jax.ShapeDtypeStruct((N, C, S), act_dtype),
        grid_spec=pltpu.PrefetchScalarGridSpec(
            num_scalar_prefetch=0,
            grid=grid,
            in_specs=[act_spec, act_spec,
                      w_spec, w_spec, w_spec,
                      b_spec, b_spec, b_spec],
            out_specs=act_spec,
        ),
        compiler_params=pltpu.CompilerParams(
            dimension_semantics=("parallel", "parallel"),
            vmem_limit_bytes=vmem_limit),
    )(e, c, w1, w2, w3, b1, b2, b3)

    return out.reshape(N, C, H, W)


def init_params(key, in_channels):
    """Deterministic parameter init matching AGB.__init__ shapes."""
    keys = jax.random.split(key, 15)
    C = in_channels

    def conv_w(k):
        # nn.Conv2d(C, C, 1, bias=False) weight: (C, C, 1, 1) -> (C, C)
        return jax.random.normal(k, (C, C), jnp.float32) * 0.1

    def bn(kg, kb, km, kv):
        return (1.0 + 0.05 * jax.random.normal(kg, (C,), jnp.float32),
                0.05 * jax.random.normal(kb, (C,), jnp.float32),
                0.05 * jax.random.normal(km, (C,), jnp.float32),
                jnp.abs(1.0 + 0.05 * jax.random.normal(kv, (C,), jnp.float32)))

    g1, be1, m1, v1 = bn(keys[1], keys[2], keys[3], keys[4])
    g2, be2, m2, v2 = bn(keys[6], keys[7], keys[8], keys[9])
    g3, be3, m3, v3 = bn(keys[11], keys[12], keys[13], keys[14])

    return {
        "w1": conv_w(keys[0]), "g1": g1, "be1": be1, "m1": m1, "v1": v1,
        "w2": conv_w(keys[5]), "g2": g2, "be2": be2, "m2": m2, "v2": v2,
        "w3": conv_w(keys[10]), "g3": g3, "be3": be3, "m3": m3, "v3": v3,
    }


def _reference_agb(edge_feat, canny_feat, params):
    """Pure-JAX reference of the AGB forward (eval-mode BN) for validation."""
    w1, b1 = _fold_conv_bn(params["w1"], params["g1"], params["be1"],
                           params["m1"], params["v1"])
    w2, b2 = _fold_conv_bn(params["w2"], params["g2"], params["be2"],
                           params["m2"], params["v2"])
    w3, b3 = _fold_conv_bn(params["w3"], params["g3"], params["be3"],
                           params["m3"], params["v3"])

    def conv1x1(x, w, b):  # x: NCHW
        y = jnp.einsum("nchw,oc->nohw", x, w)
        return y + b[None, :, None, None]

    e1 = conv1x1(edge_feat, w1, b1)
    c1 = conv1x1(canny_feat, w2, b2)
    r = jnp.maximum(e1 + c1, 0.0)
    psi = jax.nn.sigmoid(conv1x1(r, w3, b3))
    return psi * c1


if __name__ == "__main__":
    key = jax.random.PRNGKey(0)
    k_e, k_c, k_p, k_e2, k_c2 = jax.random.split(key, 5)

    N, C, H, W = 2, 4, 16, 16
    edge_feat = jax.random.normal(k_e, (N, C, H, W), jnp.float32)
    canny_feat = jax.random.normal(k_c, (N, C, H, W), jnp.float32)
    params = init_params(k_p, C)

    ref = _reference_agb(edge_feat, canny_feat, params)

    # 1) f32 activations, f32 MXU operands: bit-tight vs the f32 reference.
    out_exact = jax.block_until_ready(
        agb_forward(edge_feat, canny_feat, params, mxu_dtype=jnp.float32))
    assert out_exact.shape == (N, C, H, W)
    assert jnp.allclose(out_exact, ref, atol=1e-5, rtol=1e-5), \
        "f32 (f32-MXU) mismatch vs reference"

    # 2) default fast path: f32 activations/HBM, bf16 MXU operands, f32 accum.
    out_fast = jax.block_until_ready(agb_forward(edge_feat, canny_feat, params))
    assert jnp.allclose(out_fast, ref, atol=5e-2, rtol=5e-2), \
        "f32 (bf16-MXU) mismatch vs reference"

    # 3) bf16 activations in HBM (halves DMA bytes on this bandwidth-bound op).
    out_bf16 = jax.block_until_ready(
        agb_forward(edge_feat.astype(jnp.bfloat16),
                    canny_feat.astype(jnp.bfloat16), params))
    assert out_bf16.dtype == jnp.bfloat16
    assert jnp.allclose(out_bf16.astype(jnp.float32), ref,
                        atol=5e-2, rtol=5e-2), "bf16 mismatch vs reference"

    # 4) single image: grid is forced to >= 2 spatial tiles (megacore path).
    out_n1 = jax.block_until_ready(
        agb_forward(edge_feat[:1], canny_feat[:1], params,
                    mxu_dtype=jnp.float32))
    assert jnp.allclose(out_n1, ref[:1], atol=1e-5, rtol=1e-5), "N=1 mismatch"

    # 5) ragged last spatial tile (S=320 with tile_s=128 -> last tile = 64).
    H2, W2 = 16, 20
    edge2 = jax.random.normal(k_e2, (N, C, H2, W2), jnp.float32)
    canny2 = jax.random.normal(k_c2, (N, C, H2, W2), jnp.float32)
    ref2 = _reference_agb(edge2, canny2, params)
    out2 = jax.block_until_ready(
        agb_forward(edge2, canny2, params, max_tile_s=128,
                    mxu_dtype=jnp.float32))
    assert jnp.allclose(out2, ref2, atol=1e-5, rtol=1e-5), "ragged-tile mismatch"

    print("KERNEL_OK")
</pallas_src>

<mosaic_0001>
module attributes {stable_mosaic.version = 11 : i64} {
  func.func @_agb_kernel(%arg0: i32, %arg1: i32, %arg2: memref<1x4x256xf32, #tpu.memory_space<vmem>>, %arg3: memref<1x4x256xf32, #tpu.memory_space<vmem>>, %arg4: memref<4x4xf32, #tpu.memory_space<vmem>>, %arg5: memref<4x4xf32, #tpu.memory_space<vmem>>, %arg6: memref<4x4xf32, #tpu.memory_space<vmem>>, %arg7: memref<4x1xf32, #tpu.memory_space<vmem>>, %arg8: memref<4x1xf32, #tpu.memory_space<vmem>>, %arg9: memref<4x1xf32, #tpu.memory_space<vmem>>, %arg10: memref<1x4x256xf32, #tpu.memory_space<vmem>>) attributes {dimension_semantics = [#tpu.dimension_semantics<parallel>, #tpu.dimension_semantics<parallel>], iteration_bounds = array<i64: 2, 1>, scalar_prefetch = 0 : i64, scratch_operands = 0 : i64, tpu.core_type = #tpu.core_type<tc>, window_params = [{transform_indices = @transform_0, window_bounds = array<i64: 1, 4, 256>}, {transform_indices = @transform_1, window_bounds = array<i64: 1, 4, 256>}, {pipeline_mode = #tpu.pipeline_mode<synchronous>, transform_indices = @transform_2, window_bounds = array<i64: 4, 4>}, {pipeline_mode = #tpu.pipeline_mode<synchronous>, transform_indices = @transform_3, window_bounds = array<i64: 4, 4>}, {pipeline_mode = #tpu.pipeline_mode<synchronous>, transform_indices = @transform_4, window_bounds = array<i64: 4, 4>}, {pipeline_mode = #tpu.pipeline_mode<synchronous>, transform_indices = @transform_5, window_bounds = array<i64: 4, 1>}, {pipeline_mode = #tpu.pipeline_mode<synchronous>, transform_indices = @transform_6, window_bounds = array<i64: 4, 1>}, {pipeline_mode = #tpu.pipeline_mode<synchronous>, transform_indices = @transform_7, window_bounds = array<i64: 4, 1>}, {transform_indices = @transform_8, window_bounds = array<i64: 1, 4, 256>}]} {
    %c0 = arith.constant 0 : index
    %c0_0 = arith.constant 0 : index
    %c0_1 = arith.constant 0 : index
    %0 = vector.load %arg2[%c0, %c0_0, %c0_1] : memref<1x4x256xf32, #tpu.memory_space<vmem>>, vector<1x4x256xf32>
    %1 = vector.shape_cast %0 : vector<1x4x256xf32> to vector<4x256xf32>
    %c0_2 = arith.constant 0 : index
    %c0_3 = arith.constant 0 : index
    %c0_4 = arith.constant 0 : index
    %2 = vector.load %arg3[%c0_2, %c0_3, %c0_4] : memref<1x4x256xf32, #tpu.memory_space<vmem>>, vector<1x4x256xf32>
    %3 = vector.shape_cast %2 : vector<1x4x256xf32> to vector<4x256xf32>
    %c0_5 = arith.constant 0 : index
    %c0_6 = arith.constant 0 : index
    %4 = vector.load %arg4[%c0_5, %c0_6] : memref<4x4xf32, #tpu.memory_space<vmem>>, vector<4x4xf32>
    %c0_7 = arith.constant 0 : index
    %c0_8 = arith.constant 0 : index
    %5 = vector.load %arg5[%c0_7, %c0_8] : memref<4x4xf32, #tpu.memory_space<vmem>>, vector<4x4xf32>
    %c0_9 = arith.constant 0 : index
    %c0_10 = arith.constant 0 : index
    %6 = vector.load %arg6[%c0_9, %c0_10] : memref<4x4xf32, #tpu.memory_space<vmem>>, vector<4x4xf32>
    %cst = arith.constant dense<0.000000e+00> : vector<4x256xf32>
    %7 = tpu.matmul %5, %3, %cst {dimension_numbers = #tpu.dot_dimension_numbers<[1], [0], [0], [1], [0, 0, 1, 1], [], []>} : vector<4x4xf32>, vector<4x256xf32>, vector<4x256xf32> -> vector<4x256xf32>
    %c0_11 = arith.constant 0 : index
    %c0_12 = arith.constant 0 : index
    %8 = vector.load %arg8[%c0_11, %c0_12] : memref<4x1xf32, #tpu.memory_space<vmem>>, vector<4x1xf32>
    %9 = vector.broadcast %8 : vector<4x1xf32> to vector<4x256xf32>
    %10 = arith.addf %7, %9 : vector<4x256xf32>
    %cst_13 = arith.constant dense<0.000000e+00> : vector<4x256xf32>
    %11 = tpu.matmul %4, %1, %cst_13 {dimension_numbers = #tpu.dot_dimension_numbers<[1], [0], [0], [1], [0, 0, 1, 1], [], []>} : vector<4x4xf32>, vector<4x256xf32>, vector<4x256xf32> -> vector<4x256xf32>
    %c0_14 = arith.constant 0 : index
    %c0_15 = arith.constant 0 : index
    %12 = vector.load %arg7[%c0_14, %c0_15] : memref<4x1xf32, #tpu.memory_space<vmem>>, vector<4x1xf32>
    %13 = vector.broadcast %12 : vector<4x1xf32> to vector<4x256xf32>
    %14 = arith.addf %11, %13 : vector<4x256xf32>
    %15 = arith.addf %14, %10 : vector<4x256xf32>
    %cst_16 = arith.constant 0.000000e+00 : f32
    %16 = vector.broadcast %cst_16 : f32 to vector<4x256xf32>
    %17 = arith.maximumf %15, %16 : vector<4x256xf32>
    %cst_17 = arith.constant dense<0.000000e+00> : vector<4x256xf32>
    %18 = tpu.matmul %6, %17, %cst_17 {dimension_numbers = #tpu.dot_dimension_numbers<[1], [0], [0], [1], [0, 0, 1, 1], [], []>} : vector<4x4xf32>, vector<4x256xf32>, vector<4x256xf32> -> vector<4x256xf32>
    %c0_18 = arith.constant 0 : index
    %c0_19 = arith.constant 0 : index
    %19 = vector.load %arg9[%c0_18, %c0_19] : memref<4x1xf32, #tpu.memory_space<vmem>>, vector<4x1xf32>
    %20 = vector.broadcast %19 : vector<4x1xf32> to vector<4x256xf32>
    %21 = arith.addf %18, %20 : vector<4x256xf32>
    %22 = arith.negf %21 : vector<4x256xf32>
    %23 = math.exp %22 : vector<4x256xf32>
    %cst_20 = arith.constant 1.000000e+00 : f32
    %24 = vector.broadcast %cst_20 : f32 to vector<4x256xf32>
    %25 = arith.addf %24, %23 : vector<4x256xf32>
    %26 = arith.divf %24, %25 : vector<4x256xf32>
    %27 = arith.mulf %26, %10 : vector<4x256xf32>
    %c0_21 = arith.constant 0 : index
    %c0_22 = arith.constant 0 : index
    %c0_23 = arith.constant 0 : index
    %28 = vector.load %arg10[%c0_21, %c0_22, %c0_23] : memref<1x4x256xf32, #tpu.memory_space<vmem>>, vector<1x4x256xf32>
    %29 = vector.shape_cast %28 : vector<1x4x256xf32> to vector<4x256xf32>
    %30 = vector.shape_cast %27 : vector<4x256xf32> to vector<1x4x256xf32>
    tpu.vector_store %arg10[%c0_21, %c0_22, %c0_23], %30 {strides = array<i32>} : memref<1x4x256xf32, #tpu.memory_space<vmem>>, vector<1x4x256xf32>,
    return
  }
  func.func @transform_0(%arg0: i32, %arg1: i32) -> (i32, i32, i32) {
    %c0_i32 = arith.constant 0 : i32
    %c0_i32_0 = arith.constant 0 : i32
    return %arg0, %c0_i32, %arg1 : i32, i32, i32
  }
  func.func @transform_1(%arg0: i32, %arg1: i32) -> (i32, i32, i32) {
    %c0_i32 = arith.constant 0 : i32
    %c0_i32_0 = arith.constant 0 : i32
    return %arg0, %c0_i32, %arg1 : i32, i32, i32
  }
  func.func @transform_2(%arg0: i32, %arg1: i32) -> (i32, i32) {
    %c0_i32 = arith.constant 0 : i32
    %c0_i32_0 = arith.constant 0 : i32
    %c0_i32_1 = arith.constant 0 : i32
    return %c0_i32, %c0_i32_0 : i32, i32
  }
  func.func @transform_3(%arg0: i32, %arg1: i32) -> (i32, i32) {
    %c0_i32 = arith.constant 0 : i32
    %c0_i32_0 = arith.constant 0 : i32
    %c0_i32_1 = arith.constant 0 : i32
    return %c0_i32, %c0_i32_0 : i32, i32
  }
  func.func @transform_4(%arg0: i32, %arg1: i32) -> (i32, i32) {
    %c0_i32 = arith.constant 0 : i32
    %c0_i32_0 = arith.constant 0 : i32
    %c0_i32_1 = arith.constant 0 : i32
    return %c0_i32, %c0_i32_0 : i32, i32
  }
  func.func @transform_5(%arg0: i32, %arg1: i32) -> (i32, i32) {
    %c0_i32 = arith.constant 0 : i32
    %c0_i32_0 = arith.constant 0 : i32
    %c0_i32_1 = arith.constant 0 : i32
    return %c0_i32, %c0_i32_0 : i32, i32
  }
  func.func @transform_6(%arg0: i32, %arg1: i32) -> (i32, i32) {
    %c0_i32 = arith.constant 0 : i32
    %c0_i32_0 = arith.constant 0 : i32
    %c0_i32_1 = arith.constant 0 : i32
    return %c0_i32, %c0_i32_0 : i32, i32
  }
  func.func @transform_7(%arg0: i32, %arg1: i32) -> (i32, i32) {
    %c0_i32 = arith.constant 0 : i32
    %c0_i32_0 = arith.constant 0 : i32
    %c0_i32_1 = arith.constant 0 : i32
    return %c0_i32, %c0_i32_0 : i32, i32
  }
  func.func @transform_8(%arg0: i32, %arg1: i32) -> (i32, i32, i32) {
    %c0_i32 = arith.constant 0 : i32
    %c0_i32_0 = arith.constant 0 : i32
    return %arg0, %c0_i32, %arg1 : i32, i32, i32
  }
}

</mosaic_0001>

<bundles_post_ra>
// kernel: tpu_custom_call.1
= control target key start
LH: loop header
LB: loop body
LE: loop exit
PB: predicated region body
PF: predicated region fallthrough
CT: control target
= control target key end

     0   :  { %13 = vsyncpa [#allocation3], 0  ;;  %s1263_s0 = inlined_call_operand.hbm [shape: f32[2,4,256], index: 0, kind: input, shape index: {}]   ;;  %s1264_s1 = inlined_call_operand.vmem [shape: f32[2,4,256], index: 1, kind: input, shape index: {}]   ;;  %s1265_s2 = inlined_call_operand.vmem [shape: f32[4,4], index: 2, kind: input, shape index: {}]   ;;  %s1266_s3 = inlined_call_operand.vmem [shape: f32[4,4], index: 3, kind: input, shape index: {}]   ;;  %s1267_s4 = inlined_call_operand.vmem [shape: f32[4,4], index: 4, kind: input, shape index: {}]   ;;  %s1268_s5 = inlined_call_operand.vmem [shape: f32[4,1], index: 5, kind: input, shape index: {}]   ;;  %s1269_s6 = inlined_call_operand.vmem [shape: f32[4,1], index: 6, kind: input, shape index: {}]   ;;  %s1270_s7 = inlined_call_operand.vmem [shape: f32[4,1], index: 7, kind: input, shape index: {}]   ;;  %s1271_s8 = inlined_call_operand.hbm [shape: f32[2,4,256], index: 8, kind: output, shape index: {}]  }
   0x1   :  { %15 = vsyncpa [#allocation3 + $0x1], 0 }
   0x2   :  { %16 = vsyncpa [#allocation4], 0 }
   0x3   :  { %18 = vsyncpa [#allocation4 + $0x1], 0  ;;  %s1055_s27 = smov 0   ;;  %s1057_s28 = smov 0  }
   0x4   :  { %s1059_s29 = smov 0   ;;  %s1061_s30 = smov 0  }
   0x5   :  { %s1063_s9 = smov 0   ;;  %s1065_s10 = smov 0  }
   0x6 LB: > { %s785_s11 = sadd.s32 4294967295, %s1004_s10   ;;  %s786_s12 = sadd.s32 4294967294, %s1004_s10   ;;  %s1004_s10 = sphi %s1065_s10, %s24_s10   ;;  %s1000_s9 = sphi %s1063_s9, %s1289_s9   ;;  %s996_s30 = sphi %s1061_s30, %s1288_s30   ;;  %s992_s29 = sphi %s1059_s29, %s1287_s29   ;;  %s988_s28 = sphi %s1057_s28, %s1286_s28   ;;  %s984_s27 = sphi %s1055_s27, %s1285_s27  }
   0x7   : > { %s36_s13 = sadd.s32 1, %s1000_s9  ;;  %s45_s14 = sadd.s32 1, %s992_s29 }
   0x8   : > { %p38_p0 = scmp.ge.s32.totalorder %s36_s13, 2  ;;  %p52_p1 = scmp.ne.s32.totalorder %s992_s29, %s988_s28 }
   0x9   : > { %p53_p2 = scmp.eq.s32.totalorder %s1004_s10, 0  ;;  %p58_p3 = scmp.ne.s32.totalorder %s988_s28, %s984_s27 }
   0xa   : > { %s1291_s13 = smov (%p38_p0, %s36_s13), 0  ;;  %p59_p5 = scmp.eq.s32.totalorder %s785_s11, 0 }
   0xb   : > { %p1096_p4 = por %p53_p2, %p52_p1  ;;  %s40_s16 = ssub.s32 %s1000_s9, %s1291_s13 }
   0xc   : > { %p238_p6 = scmp.eq.s32.totalorder %s785_s11, 1  ;;  %p43_p7 = scmp.eq.s32.totalorder %s40_s16, 0 }
   0xd   : > { %p1102_p8 = por %p59_p5, %p58_p3  ;;  %p244_p10 = scmp.eq.s32.totalorder %s786_s12, 1 }
   0xe   : > { %p1106_p9 = por %p238_p6, %p52_p1  ;;  %p828_p13 = scmp.lt.s32.totalorder %s1004_s10, 2 }
   0xf   : > { %s1111_s19 = scalar_select %p43_p7, %s992_s29, %s45_s14  }
  0x10   : > { %s1276_s18 = scalar_select %p1106_p9, 1, 0 }
  0x11   : > { %p1113_p11 = por %p244_p10, %p58_p3  ;;  %s282_s21 = sand.u32 1, %s992_s29  }
  0x12   : > { %s789_s22 = sshll.u32 %s282_s21, 3  ;;  %s813_s23 = sshll.u32 %s1000_s9, 7 }
  0x13   : > { %s1277_s20 = scalar_select %p1113_p11, 1, 0 }
  0x14   : > { %s1124_s26 = scalar_lea.hbm %s1263_s0, %s813_s23  ;;  %s286_s11 = scalar_lea.vmem [#allocation2], %s789_s22 }
  0x15   : > { %s296_s12 = sshll.u32 %s286_s11, 4  ;;  %p1130_p0 = pnand %p828_p13, %p1096_p4  ;;  %s1126_s12 = int_to_ptr.vmem [resolvable:$true] %s296_s12 }
  0x16   : > { %s283_s16 = scalar_lea.sflag [#allocation3], %s282_s21  ;;  %s892_s23 = scalar_lea.hbm %s1124_s26, 128 }
  0x17   : > { %p893_p3 = scmp.ne.s32.totalorder %s1124_s26, %s892_s23  ;;  %p894_p5 = pneg %p1130_p0 }
  0x18   : > { %s897_s15 = scalar_lea.hbm %s1263_s0, 256  ;;  %p898_p4 = scmp.lt.u32.totalorder %s1124_s26, %s1263_s0 }
  0x19   : > { %p895_p6 = pnand %p894_p5, %p893_p3  ;;  %p899_p10 = scmp.lt.u32.totalorder %s897_s15, %s892_s23 }
  0x1a   : > { %p901_p12 = scmp.lt.u32.totalorder %s892_s23, %s1124_s26 }
  0x1b   : > { %p896_p7 = pneg %p895_p6  ;;  %p900_p13 = por %p899_p10, %p898_p4 }
  0x1d   : > { %p902_p1 = por %p901_p12, %p900_p13 }
  0x1f   : > { %p903_p2 = pnand %p902_p1, %p896_p7 }
  0x21   : > { %906 = shalt.err (!%p903_p2)
}
  0x22   : > { %s907_s21 = scalar_lea.vmem %s1126_s12, 128  ;;  %s1006_s22 = smov [#allocation2]  }
  0x23   : > { %p908_p3 = scmp.ne.s32.totalorder %s1126_s12, %s907_s21  ;;  %s912_s24 = sshll.u32 %s1006_s22, 4  ;;  %s913_s24 = int_to_ptr.vmem [resolvable:$false] %s912_s24 }
  0x24   : > { %s914_s25 = scalar_lea.vmem %s913_s24, 256  ;;  %p915_p9 = scmp.lt.s32.totalorder %s1126_s12, %s913_s24 }
  0x25   : > { %p910_p6 = pnand %p908_p3, %p894_p5  ;;  %p916_p4 = scmp.lt.s32.totalorder %s914_s25, %s907_s21 }
  0x27   : > { %p911_p11 = pneg %p910_p6  ;;  %p917_p10 = por %p916_p4, %p915_p9 }
  0x29   : > { %p918_p12 = pnand %p917_p10, %p911_p11 }
  0x2b   : > { %921 = shalt.err (!%p918_p12)
}
  0x2c   : > { %823 = dma.hbm_to_vmem [thread:$0]  (!%p1130_p0), %s1124_s26, 128, %s1126_s12, %s283_s16  }
  0x2d   : > { %p1279_p1 = scmp.lt.s32.totalorder %s1004_s10, 3  ;;  %p1280_p2 = scmp.ge.s32.totalorder %s1004_s10, 1 }
  0x2f   : > { %p315_p5 = pnand %p1280_p2, %p1279_p1 }
  0x30   : > { %s1166_s23 = sand.u32 (!%p315_p5), 1, %s988_s28  }
  0x31   : > { %318 = sbr.rel (%p315_p5) target bundleno = 548 (0x224), region = 52  ;;  %s1273_s15 = sshll.u32 (!%p315_p5), %s1166_s23, 3 }
  0x32   : > { %s321_s11 = scalar_lea.sflag (!%p315_p5), [#allocation3], %s1166_s23  ;;  %s324_s14 = scalar_lea.vmem (!%p315_p5), [#allocation2], %s1273_s15 }
  0x38   : > { %975 = dma.done.wait (%p1102_p8), %s321_s11, 128  }
  0x39   : > { %977 = vsyncadd (%p1102_p8), %s321_s11, 4294967168  ;;  %p368_p9 = scmp.lt.s32.totalorder %s996_s30, 1  ;;  %v1007_v0 = vmov 0.0   ;;  %v1008_v1 = vmov 0   ;;  %vm395_vm0 = vcmask 1043456   ;;  %v378_v3 = vld [vmem:[%s324_s14] sm:$0xff] }
  0x3a   : > { %464 = vmatprep.mubr.f32.mxu0 %v1007_v0  ;;  %550 = vmatprep.mubr.f32.mxu1 %v1007_v0  ;;  %v478_v5 = vcombine.high %v378_v3, %v378_v3  ;;  %v383_v6 = vld [vmem:[%s1269_s6] sm:$0xf]  ;;  %vm391_vm1 = vcmask 31744   ;;  %s815_s17 = sshll.u32 %s996_s30, 7  ;;  %s1281_s24 = sshll.u32 %s1166_s23, 3 }
  0x3b   : > { %s369_s26 = scalar_select %p368_p9, %s996_s30, 1  ;;  %880 = vset.pattern.permute.xlu0 %v1008_v1  ;;  %881 = vset.pattern.permute.xlu1 %v1008_v1  ;;  %v381_v7 = vld [vmem:[%s1266_s3] sm:$0xf] }
  0x3c   : > { %v380_v8 = vld [vmem:[%s1265_s2] sm:$0xf]  ;;  %386 = vperm.xlu0 %880, %v383_v6   ;;  %800 = vmatprep.subr.msk.mxu1 %vm395_vm0, %v478_v5  ;;  %s365_s25 = scalar_lea.vmem [#allocation5], %s1281_s24  ;;  %s667_s15 = scalar_lea.sflag [#allocation4], %s1166_s23 }
  0x3d   : > { %s814_s12 = sshll.u32 %s369_s26, 3  ;;  %v471_v9 = vld [vmem:[%s1268_s5] sm:$0xf]  ;;  %801 = vmatpush1.msk.msra.mxu1 %vm395_vm0, %v378_v3  ;;  %s683_s11 = sshll.u32 %s365_s25, 4  ;;  %s1216_s11 = int_to_ptr.vmem [resolvable:$true] %s683_s11 }
  0x3e   : > { %s375_s22 = scalar_lea.vmem %s1264_s1, %s814_s12  ;;  %802 = vmatmul.mubr.msk.f32.vlgmr.msra.gmra.mrb[0].mxu1 %vm391_vm1, %v380_v8  ;;  %v561_v10 = vld [vmem:[%s1270_s7] sm:$0xf]  ;;  %s1214_s12 = scalar_lea.hbm %s1271_s8, %s815_s17 }
  0x3f   : > { %v379_v2 = vld [vmem:[%s375_s22] sm:$0xff]  ;;  %564 = vperm.xlu1 %881, %v561_v10   ;;  %s922_s16 = scalar_lea.vmem %s1216_s11, 128  ;;  %p1282_p11 = scmp.ne.s32.totalorder %s1276_s18, 0 }
  0x40   : > { %v390_v4 = vcombine.high %v379_v2, %v379_v2  ;;  %474 = vperm.xlu0 %880, %v471_v9   ;;  %v382_v25 = vld [vmem:[%s1267_s4] sm:$0xf]  ;;  %p923_p8 = scmp.ne.s32.totalorder %s1216_s11, %s922_s16  ;;  %s1009_s30 = smov [#allocation5]  }
  0x41   : > { %s926_s21 = sshll.u32 %s1009_s30, 4  ;;  %s927_s21 = int_to_ptr.vmem [resolvable:$false] %s926_s21 }
  0x42   : > { %797 = vmatprep.subr.msk.mxu0 %vm395_vm0, %v390_v4  ;;  %p924_p0 = pnand %p923_p8, %p1282_p11  ;;  %s928_s22 = scalar_lea.vmem %s927_s21, 256 }
  0x43   : > { %798 = vmatpush1.msk.msra.mxu0 %vm395_vm0, %v379_v2  ;;  %p929_p13 = scmp.lt.s32.totalorder %s1216_s11, %s927_s21  ;;  %p930_p3 = scmp.lt.s32.totalorder %s928_s22, %s922_s16 }
  0x44   : > { %799 = vmatmul.mubr.msk.f32.vlgmr.msra.gmra.mrb[0].mxu0 %vm391_vm1, %v381_v7  ;;  %p925_p7 = pneg %p924_p0 }
  0x45   : > { %640 = vmatprep.mubr.f32.mxu0 %v1007_v0  ;;  %p931_p6 = por %p930_p3, %p929_p13 }
  0x47   : > { %p932_p4 = pnand %p931_p6, %p925_p7 }
  0xbb   : > { %v387_v11 = vpop.permute.xlu0 %386 }
  0xbe   : > { %v565_v26 = vpop.permute.xlu1 %564 }
  0xbf   : > { %v475_v12 = vpop.permute.xlu0 %474 }
 0x111   : > { %v552_v14 = vpop.f32.mrb[0].mxu1 }
 0x112   : > { %v553_v16 = vadd.f32 %v552_v14, %v475_v12  ;;  %v554_v18 = vpop.f32.mrb[1].mxu1 }
 0x113   : > { %v555_v20 = vadd.f32 %v554_v18, %v475_v12 }
 0x117   : > { %v466_v13 = vpop.f32.mrb[0].mxu0 }
 0x118   : > { %v467_v15 = vadd.f32 %v466_v13, %v387_v11  ;;  %v468_v17 = vpop.f32.mrb[1].mxu0 }
 0x119   : > { %v469_v19 = vadd.f32 %v468_v17, %v387_v11 }
 0x11a   : > { %v557_v21 = vadd.f32 %v553_v16, %v467_v15 }
 0x11b   : > { %v558_v22 = vadd.f32 %v555_v20, %v469_v19 }
 0x11c   : > { %v559_v24 = vmax.f32 %v557_v21, 0.0 }
 0x11d   : > { %v560_v23 = vmax.f32 %v558_v22, 0.0 }
 0x11f   : > { %803 = vmatprep.subr.msk.mxu0 %vm395_vm0, %v560_v23 }
 0x120   : > { %804 = vmatpush1.msk.msra.mxu0 %vm395_vm0, %v559_v24 }
 0x121   : > { %805 = vmatmul.mubr.msk.f32.vlgmr.msra.gmra.mrb[2].mxu0 %vm391_vm1, %v382_v25 }
 0x1f4   : > { %v642_v27 = vpop.f32.mrb[2].mxu0 }
 0x1f5   : > { %v643_v28 = vadd.f32 %v642_v27, %v565_v26  ;;  %v644_v29 = vpop.f32.mrb[3].mxu0 }
 0x1f6   : > { %v645_v30 = vadd.f32 %v644_v29, %v565_v26 }
 0x1f7   : > { %v806_v31 = vmul.f32 -1.442695, %v643_v28 }
 0x1f8   : > { %v807_v32 = vmul.f32 -1.442695, %v645_v30 }
 0x1f9   : > { %884 = vpow2.f32 %v806_v31 }
 0x1fa   : > { %886 = vpow2.f32 %v807_v32 }
 0x203   : > { %v885_v33 = vpop.eup %884 }
 0x204   : > { %v887_v34 = vpop.eup %886  ;;  %v653_v35 = vadd.f32 1.0, %v885_v33 }
 0x205   : > { %v654_v36 = vadd.f32 1.0, %v887_v34 }
 0x206   : > { %888 = vrcp.f32 %v653_v35 }
 0x207   : > { %890 = vrcp.f32 %v654_v36 }
 0x210   : > { %v889_v37 = vpop.eup %888 }
 0x211   : > { %v891_v38 = vpop.eup %890  ;;  %v659_v39 = vmul.f32 %v889_v37, %v467_v15 }
 0x212   : > { %v660_v40 = vmul.f32 %v891_v38, %v469_v19 }
 0x214   : > { %v663_v41 = vcombine.low %v659_v39, %v660_v40 }
 0x216   : > { %665 = vst [vmem:[%s365_s25] sm:$0xff] %v663_v41 }
 0x217   : > { %935 = shalt.err (!%p932_p4)
}
 0x218   : > { %s936_s23 = scalar_lea.hbm %s1214_s12, 128  ;;  %s940_s25 = scalar_lea.hbm %s1271_s8, 256 }
 0x219   : > { %p937_p10 = scmp.ne.s32.totalorder %s1214_s12, %s936_s23  ;;  %p941_p2 = scmp.lt.u32.totalorder %s1214_s12, %s1271_s8 }
 0x21a   : > { %p942_p5 = scmp.lt.u32.totalorder %s940_s25, %s936_s23  ;;  %p944_p8 = scmp.lt.u32.totalorder %s936_s23, %s1214_s12 }
 0x21b   : > { %p938_p12 = pnand %p937_p10, %p1282_p11 }
 0x21c   : > { %p943_p9 = por %p942_p5, %p941_p2 }
 0x21d   : > { %p939_p1 = pneg %p938_p12 }
 0x21e   : > { %p945_p0 = por %p944_p8, %p943_p9 }
 0x220   : > { %p946_p7 = pnand %p945_p0, %p939_p1 }
 0x222   : > { %949 = shalt.err (!%p946_p7)
}
 0x223   : > { %818 = dma.vmem_to_hbm [thread:$0]  (%p1282_p11), %s1216_s11, 128, %s1214_s12, %s667_s15  }
 0x224 PF: > { %s695_s16 = sand.u32 1, %s984_s27   ;;  %p1283_p13 = scmp.ne.s32.totalorder %s1277_s20, 0 }
 0x225   : > { %p1284_p3 = scmp.ge.s32.totalorder %s1004_s10, 2  ;;  %s696_s30 = scalar_lea.sflag [#allocation4], %s695_s16 }
 0x227   : > { %p825_p6 = pnand %p1284_p3, %p1283_p13 }
 0x229   : > { %979 = dma.done.wait (!%p825_p6), %s696_s30, 128  }
 0x22a   : > { %981 = vsyncadd (!%p825_p6), %s696_s30, 4294967168  ;;  %s24_s10 = sadd.s32 1, %s1004_s10   ;;  %s1285_s27 = smov %s988_s28 }
 0x22b   : > { %p21_p4 = scmp.ge.s32.totalorder %s24_s10, 4   ;;  %s1286_s28 = smov %s992_s29 }
 0x22c   : > { %s1287_s29 = smov %s1111_s19  ;;  %s1288_s30 = smov %s1000_s9 }
 0x22d   : > { %s1289_s9 = smov %s1291_s13  ;;  %23 = sbr.rel (!%p21_p4) target bundleno = 6 (0x6), region = 100 }
 0x234   :  { %701 = vsyncpa [#allocation3], 1 }
 0x235   :  { %703 = vsyncpa [#allocation3 + $0x1], 1 }
 0x236   :  { %704 = vsyncpa [#allocation4], 1 }
 0x237   :  { %706 = vsyncpa [#allocation4 + $0x1], 1 }

</bundles_post_ra>
